<compile_context>
chip_gen: v6e
topology: v6e:2x2x1
jax: 0.10.0
libtpu: 0.0.40
codegen_flags: <defaults>
</compile_context>

<pallas_src>
import math
import numpy as np
import jax
import jax.numpy as jnp
from jax import lax
from jax.experimental import pallas as pl
from jax.experimental.pallas import tpu as pltpu

# ----------------------------- model config ---------------------------------
IN_CHANNEL = 3
HIDDEN = 128
OUT_CHANNEL = 64
STYLE_CHANNEL = 512
N_FREQ = 10
PE_DIM = IN_CHANNEL + IN_CHANNEL * 2 * N_FREQ          # include_input=True -> 63
PE_DIM_PAD = 64                                        # lane-friendly PE width
X_FEAT = 8                                             # [x, y, z, 1, 0, 0, 0, 0]
STYLE_OUT = HIDDEN - PE_DIM                            # 128 - 63 = 65
LRELU_SLOPE = 0.2
LRELU_GAIN = math.sqrt(2.0)


def _round_up(x, m):
    return ((x + m - 1) // m) * m


def _leaky(y):
    """LeakyReLU(0.2) WITHOUT the sqrt(2) gain (gain folded into next weights)."""
    return jnp.where(y >= 0, y, LRELU_SLOPE * y)


def _leaky_gain(y):
    return _leaky(y) * LRELU_GAIN


# ----------------------- fused positional-encoding matrix --------------------
def _pe_matrix():
    """F (8, 64) f32 such that for x8 = [x, y, z, 1, 0, 0, 0, 0]:
         args = x8 @ F
         pe   = where(col < 3, args, sin(args))
       reproduces [x, y, z, sin(2^i*pi*x_c)..., cos(2^i*pi*x_c)..., 0] in the
       torch PositionalEncoding order (cos via sin(t + pi/2), phase carried by
       the constant 1 channel)."""
    f = np.zeros((X_FEAT, PE_DIM_PAD), np.float32)
    for c in range(IN_CHANNEL):                       # include_input passthrough
        f[c, c] = 1.0
    for j in range(IN_CHANNEL * N_FREQ):              # 30 (freq-major, channel-minor)
        freq = (2.0 ** (j // IN_CHANNEL)) * math.pi
        chan = j % IN_CHANNEL
        f[chan, IN_CHANNEL + j] = freq                               # sin columns 3..32
        f[chan, IN_CHANNEL + IN_CHANNEL * N_FREQ + j] = freq         # cos columns 33..62
        f[IN_CHANNEL, IN_CHANNEL + IN_CHANNEL * N_FREQ + j] = math.pi / 2.0
    return jnp.asarray(f)                              # column 63 stays zero


# ----------------------------- parameters ------------------------------------
def make_params(key):
    """Deterministic synthetic parameters (equalized-lr style, wscale folded)."""
    ks = jax.random.split(key, 10)

    def eq_linear(kw, kb, fan_in, fan_out):
        scale = 1.0 / math.sqrt(fan_in)  # wscale_gain=1.0, lr_mul=1.0
        w = jax.random.normal(kw, (fan_in, fan_out), jnp.float32) * scale
        b = jax.random.normal(kb, (1, fan_out), jnp.float32) * 0.1
        return w, b

    params = {}
    # fc_style: style_channel -> hidden - pe_dim      (fc_x is unused in forward)
    params["ws"], params["bs"] = eq_linear(ks[0], ks[1], STYLE_CHANNEL, STYLE_OUT)
    # main_layer0: hidden -> hidden, split into [pe rows | style rows]
    w0, params["b0"] = eq_linear(ks[2], ks[3], HIDDEN, HIDDEN)
    params["w0x"] = w0[:PE_DIM]      # (63, 128)
    params["w0s"] = w0[PE_DIM:]      # (65, 128)
    # main_layer1/2: hidden -> hidden
    params["w1"], params["b1"] = eq_linear(ks[4], ks[5], HIDDEN, HIDDEN)
    params["w2"], params["b2"] = eq_linear(ks[6], ks[7], HIDDEN, HIDDEN)
    # main_layer3: hidden -> out_channel (no activation)
    params["w3"], params["b3"] = eq_linear(ks[8], ks[9], HIDDEN, OUT_CHANNEL)
    return params


# ----------------------------- Pallas kernel ---------------------------------
def sky_decoder_kernel(x_ref, s_ref, f_ref, w0_ref, w1_ref, b1_ref,
                       w2_ref, b2_ref, w3_ref, b3_ref, o_ref):
    """One (batch, row-tile) step.
       x_ref: (tm, 8) raw rows [x,y,z,1,0,0,0,0] f32
       s_ref: (1, 128) hoisted per-batch style + b0, f32
       f_ref: (8, 64) PE frequency/phase matrix, f32
       w*:    bf16 weights (resident), b*: f32 biases."""
    cd = w1_ref.dtype  # MXU input dtype (bf16); accumulation stays f32

    # Fused positional encoding: one tiny f32 MXU matmul + one EUP sin.
    args = jnp.dot(x_ref[...], f_ref[...], preferred_element_type=jnp.float32)   # (tm, 64)
    lane = lax.broadcasted_iota(jnp.int32, args.shape, 1)
    pe = jnp.where(lane < IN_CHANNEL, args, jnp.sin(args))    # cos(t) == sin(t + pi/2)

    # main_layer0: PE half on the MXU + precomputed f32 style/bias row, LeakyReLU.
    h = jnp.dot(pe.astype(cd), w0_ref[...], preferred_element_type=jnp.float32)
    h = _leaky(h + s_ref[...])
    # main_layer1 / main_layer2 (activated; sqrt(2) gain folded into w1/w2/w3).
    h = _leaky(jnp.dot(h.astype(cd), w1_ref[...],
                       preferred_element_type=jnp.float32) + b1_ref[...])
    h = _leaky(jnp.dot(h.astype(cd), w2_ref[...],
                       preferred_element_type=jnp.float32) + b2_ref[...])
    # main_layer3 (no activation) + final tanh.
    h = jnp.dot(h.astype(cd), w3_ref[...],
                preferred_element_type=jnp.float32) + b3_ref[...]
    o_ref[...] = jnp.tanh(h)


# ----------------------------- wrapper ----------------------------------------
def sky_decoder(x, z, params, tm=2048, compute_dtype=jnp.bfloat16):
    """x: (B, N, 3) f32, z: (B, style_channel) f32 -> (B*N, out_channel) f32."""
    B, N, C = x.shape
    assert C == IN_CHANNEL

    # ---- hoisted style path (linear up to the first LeakyReLU), kept f32.
    style = z @ params["ws"] + params["bs"]                    # (B, 65)
    style_h = style @ params["w0s"] + params["b0"]             # (B, 128), b0 folded
    style_h = style_h.reshape(B, 1, HIDDEN)                    # per-batch resident row

    # ---- row tiling: big tiles amortize per-step overhead; keep >= 2 grid steps
    # so both v7x TensorCores get work when B == 1.
    tm = max(8, min(int(tm), _round_up(N, 8)))
    tm = _round_up(tm, 8)
    while B * pl.cdiv(N, tm) < 2 and tm > 8:
        tm = _round_up(max(8, tm // 2), 8)
    n_pad = pl.cdiv(N, tm) * tm

    # ---- compact per-row kernel input: [x, y, z, 1, 0, 0, 0, 0]  (32 B/row).
    x_pad = jnp.pad(x.astype(jnp.float32), ((0, 0), (0, n_pad - N), (0, 0)))
    x_feat = jnp.concatenate(
        [x_pad,
         jnp.ones((B, n_pad, 1), jnp.float32),
         jnp.zeros((B, n_pad, X_FEAT - IN_CHANNEL - 1), jnp.float32)], axis=-1)

    f_mat = _pe_matrix()                                       # (8, 64) f32

    # ---- weights: PE rows of main_layer0 zero-padded 63 -> 64; LeakyReLU sqrt(2)
    # gain folded into the following layer's weights; bf16 for the MXU.
    w0p = jnp.pad(params["w0x"],
                  ((0, PE_DIM_PAD - PE_DIM), (0, 0))).astype(compute_dtype)   # (64, 128)
    w1 = (params["w1"] * LRELU_GAIN).astype(compute_dtype)
    w2 = (params["w2"] * LRELU_GAIN).astype(compute_dtype)
    w3 = (params["w3"] * LRELU_GAIN).astype(compute_dtype)
    b1, b2, b3 = params["b1"], params["b2"], params["b3"]      # f32

    # Constant index_map -> weights stay resident across grid steps (no re-DMA).
    grid_spec = pltpu.PrefetchScalarGridSpec(
        num_scalar_prefetch=0,
        grid=(B, n_pad // tm),
        in_specs=[
            pl.BlockSpec((None, tm, X_FEAT), lambda b, i: (b, i, 0)),      # raw rows
            pl.BlockSpec((None, 1, HIDDEN), lambda b, i: (b, 0, 0)),       # style row
            pl.BlockSpec((X_FEAT, PE_DIM_PAD), lambda b, i: (0, 0)),       # PE matrix
            pl.BlockSpec((PE_DIM_PAD, HIDDEN), lambda b, i: (0, 0)),       # w0 (pe rows)
            pl.BlockSpec((HIDDEN, HIDDEN), lambda b, i: (0, 0)),           # w1
            pl.BlockSpec((1, HIDDEN), lambda b, i: (0, 0)),                # b1
            pl.BlockSpec((HIDDEN, HIDDEN), lambda b, i: (0, 0)),           # w2
            pl.BlockSpec((1, HIDDEN), lambda b, i: (0, 0)),                # b2
            pl.BlockSpec((HIDDEN, OUT_CHANNEL), lambda b, i: (0, 0)),      # w3
            pl.BlockSpec((1, OUT_CHANNEL), lambda b, i: (0, 0)),           # b3
        ],
        out_specs=pl.BlockSpec((None, tm, OUT_CHANNEL), lambda b, i: (b, i, 0)),
    )

    m_pad = B * n_pad
    itemsize = jnp.dtype(compute_dtype).itemsize
    w_flop_elems = (X_FEAT * PE_DIM_PAD + PE_DIM_PAD * HIDDEN
                    + 2 * HIDDEN * HIDDEN + HIDDEN * OUT_CHANNEL)
    weight_bytes = (X_FEAT * PE_DIM_PAD * 4
                    + (PE_DIM_PAD * HIDDEN + 2 * HIDDEN * HIDDEN
                       + HIDDEN * OUT_CHANNEL) * itemsize
                    + (2 * HIDDEN + OUT_CHANNEL) * 4
                    + B * HIDDEN * 4)
    cost = pl.CostEstimate(
        flops=2 * m_pad * w_flop_elems,
        transcendentals=m_pad * (PE_DIM_PAD + OUT_CHANNEL),    # fused sin + tanh
        bytes_accessed=m_pad * (X_FEAT + OUT_CHANNEL) * 4 + weight_bytes,
    )

    out = pl.pallas_call(
        sky_decoder_kernel,
        out_shape=jax.ShapeDtypeStruct((B, n_pad, OUT_CHANNEL), jnp.float32),
        grid_spec=grid_spec,
        compiler_params=pltpu.CompilerParams(
            dimension_semantics=("parallel", "parallel"),      # megacore / v7x 2-TC
            vmem_limit_bytes=32 * 1024 * 1024,
        ),
        cost_estimate=cost,
    )(x_feat, style_h, f_mat, w0p, w1, b1, w2, b2, w3, b3)

    return out[:, :N, :].reshape(B * N, OUT_CHANNEL)


# ----------------------------- references ------------------------------------
def positional_encoding(p):
    """p: (M, 3) -> (M, 63). include_input=True, freqs = 2^i * pi."""
    freqs = (2.0 ** jnp.arange(N_FREQ, dtype=jnp.float32)) * jnp.pi
    xb = p[:, None, :] * freqs[:, None]
    m = p.shape[0]
    return jnp.concatenate(
        [p, jnp.sin(xb).reshape(m, -1), jnp.cos(xb).reshape(m, -1)], axis=-1)


def sky_decoder_ref(x, z, params):
    """Spec-faithful pure-f32 reference (torch forward order: concat + 4 layers)."""
    B, N, C = x.shape
    M = B * N
    x_pe = positional_encoding(x.reshape(M, C))
    z_rep = jnp.broadcast_to(z[:, None, :], (B, N, z.shape[-1])).reshape(M, -1)
    style = z_rep @ params["ws"] + params["bs"]
    feat = jnp.concatenate([x_pe, style], axis=1)
    w0 = jnp.concatenate([params["w0x"], params["w0s"]], axis=0)
    feat = _leaky_gain(feat @ w0 + params["b0"])
    feat = _leaky_gain(feat @ params["w1"] + params["b1"])
    feat = _leaky_gain(feat @ params["w2"] + params["b2"])
    feat = feat @ params["w3"] + params["b3"]
    return jnp.tanh(feat)


def sky_decoder_mirror_ref(x, z, params, compute_dtype=jnp.bfloat16):
    """Plain-JAX mirror of exactly the kernel math (same style hoist, fused-PE
    formulation with cos(t)=sin(t+pi/2), gain fold, bf16 casts, f32 accumulate)."""
    B, N, C = x.shape
    M = B * N
    style = z @ params["ws"] + params["bs"]
    style_h = style @ params["w0s"] + params["b0"]             # (B, 128), f32
    s = jnp.broadcast_to(style_h[:, None, :], (B, N, HIDDEN)).reshape(M, HIDDEN)
    x8 = jnp.concatenate([x.reshape(M, C).astype(jnp.float32),
                          jnp.ones((M, 1), jnp.float32),
                          jnp.zeros((M, X_FEAT - C - 1), jnp.float32)], axis=-1)
    args = x8 @ _pe_matrix()
    lane = jnp.arange(PE_DIM_PAD)[None, :]
    pe = jnp.where(lane < IN_CHANNEL, args, jnp.sin(args))
    cd = compute_dtype
    w0p = jnp.pad(params["w0x"], ((0, PE_DIM_PAD - PE_DIM), (0, 0))).astype(cd)
    w1 = (params["w1"] * LRELU_GAIN).astype(cd)
    w2 = (params["w2"] * LRELU_GAIN).astype(cd)
    w3 = (params["w3"] * LRELU_GAIN).astype(cd)
    h = jnp.dot(pe.astype(cd), w0p, preferred_element_type=jnp.float32)
    h = _leaky(h + s)
    h = _leaky(jnp.dot(h.astype(cd), w1, preferred_element_type=jnp.float32) + params["b1"])
    h = _leaky(jnp.dot(h.astype(cd), w2, preferred_element_type=jnp.float32) + params["b2"])
    h = jnp.dot(h.astype(cd), w3, preferred_element_type=jnp.float32) + params["b3"]
    return jnp.tanh(h)


# ----------------------------- main -------------------------------------------
if __name__ == "__main__":
    key = jax.random.PRNGKey(0)
    k_param, k_x, k_z = jax.random.split(key, 3)

    B, N = 2, 8
    x = jax.random.normal(k_x, (B, N, IN_CHANNEL), jnp.float32)
    z = jax.random.normal(k_z, (B, STYLE_CHANNEL), jnp.float32)
    params = make_params(k_param)

    out = jax.block_until_ready(sky_decoder(x, z, params))
    assert out.shape == (B * N, OUT_CHANNEL), out.shape

    # Tight check: kernel vs plain-JAX mirror of the exact same (bf16-weight) math.
    ref_exact = jax.block_until_ready(sky_decoder_mirror_ref(x, z, params))
    np.testing.assert_allclose(np.asarray(out), np.asarray(ref_exact),
                               rtol=5e-3, atol=5e-3)

    # Semantics sanity check vs the pure-f32 torch-order reference (bf16 weights /
    # bf16 PE introduce small deviations; tanh output is bounded in [-1, 1]).
    ref_f32 = jax.block_until_ready(sky_decoder_ref(x, z, params))
    np.testing.assert_allclose(np.asarray(out), np.asarray(ref_f32),
                               rtol=7.5e-2, atol=7.5e-2)

    print("KERNEL_OK")
</pallas_src>

<mosaic_0001>
module attributes {stable_mosaic.version = 11 : i64} {
  func.func @sky_decoder_kernel(%arg0: i32, %arg1: i32, %arg2: memref<1x8x8xf32, #tpu.memory_space<vmem>>, %arg3: memref<1x1x128xf32, #tpu.memory_space<vmem>>, %arg4: memref<8x64xf32, #tpu.memory_space<vmem>>, %arg5: memref<64x128xbf16, #tpu.memory_space<vmem>>, %arg6: memref<128x128xbf16, #tpu.memory_space<vmem>>, %arg7: memref<1x128xf32, #tpu.memory_space<vmem>>, %arg8: memref<128x128xbf16, #tpu.memory_space<vmem>>, %arg9: memref<1x128xf32, #tpu.memory_space<vmem>>, %arg10: memref<128x64xbf16, #tpu.memory_space<vmem>>, %arg11: memref<1x64xf32, #tpu.memory_space<vmem>>, %arg12: memref<1x8x64xf32, #tpu.memory_space<vmem>>) attributes {dimension_semantics = [#tpu.dimension_semantics<parallel>, #tpu.dimension_semantics<parallel>], iteration_bounds = array<i64: 2, 1>, scalar_prefetch = 0 : i64, scratch_operands = 0 : i64, tpu.core_type = #tpu.core_type<tc>, window_params = [{transform_indices = @transform_0, window_bounds = array<i64: 1, 8, 8>}, {transform_indices = @transform_1, window_bounds = array<i64: 1, 1, 128>}, {pipeline_mode = #tpu.pipeline_mode<synchronous>, transform_indices = @transform_2, window_bounds = array<i64: 8, 64>}, {pipeline_mode = #tpu.pipeline_mode<synchronous>, transform_indices = @transform_3, window_bounds = array<i64: 64, 128>}, {pipeline_mode = #tpu.pipeline_mode<synchronous>, transform_indices = @transform_4, window_bounds = array<i64: 128, 128>}, {pipeline_mode = #tpu.pipeline_mode<synchronous>, transform_indices = @transform_5, window_bounds = array<i64: 1, 128>}, {pipeline_mode = #tpu.pipeline_mode<synchronous>, transform_indices = @transform_6, window_bounds = array<i64: 128, 128>}, {pipeline_mode = #tpu.pipeline_mode<synchronous>, transform_indices = @transform_7, window_bounds = array<i64: 1, 128>}, {pipeline_mode = #tpu.pipeline_mode<synchronous>, transform_indices = @transform_8, window_bounds = array<i64: 128, 64>}, {pipeline_mode = #tpu.pipeline_mode<synchronous>, transform_indices = @transform_9, window_bounds = array<i64: 1, 64>}, {transform_indices = @transform_10, window_bounds = array<i64: 1, 8, 64>}]} {
    %c0 = arith.constant 0 : index
    %c0_0 = arith.constant 0 : index
    %c0_1 = arith.constant 0 : index
    %0 = vector.load %arg2[%c0, %c0_0, %c0_1] : memref<1x8x8xf32, #tpu.memory_space<vmem>>, vector<1x8x8xf32>
    %1 = vector.shape_cast %0 : vector<1x8x8xf32> to vector<8x8xf32>
    %c0_2 = arith.constant 0 : index
    %c0_3 = arith.constant 0 : index
    %2 = vector.load %arg4[%c0_2, %c0_3] : memref<8x64xf32, #tpu.memory_space<vmem>>, vector<8x64xf32>
    %cst = arith.constant dense<0.000000e+00> : vector<8x64xf32>
    %3 = tpu.matmul %1, %2, %cst {dimension_numbers = #tpu.dot_dimension_numbers<[1], [0], [0], [1], [0, 0, 1, 1], [], []>} : vector<8x8xf32>, vector<8x64xf32>, vector<8x64xf32> -> vector<8x64xf32>
    %4 = tpu.iota {dimensions = array<i32: 1>} : vector<8x64xi32>
    %c3_i32 = arith.constant 3 : i32
    %5 = vector.broadcast %c3_i32 : i32 to vector<8x64xi32>
    %6 = arith.cmpi slt, %4, %5 : vector<8x64xi32>
    %7 = math.sin %3 : vector<8x64xf32>
    %8 = arith.select %6, %3, %7 : vector<8x64xi1>, vector<8x64xf32>
    %9 = arith.truncf %8 : vector<8x64xf32> to vector<8x64xbf16>
    %c0_4 = arith.constant 0 : index
    %c0_5 = arith.constant 0 : index
    %10 = vector.load %arg5[%c0_4, %c0_5] : memref<64x128xbf16, #tpu.memory_space<vmem>>, vector<64x128xbf16>
    %cst_6 = arith.constant dense<0.000000e+00> : vector<8x128xf32>
    %11 = tpu.matmul %9, %10, %cst_6 {dimension_numbers = #tpu.dot_dimension_numbers<[1], [0], [0], [1], [0, 0, 1, 1], [], []>} : vector<8x64xbf16>, vector<64x128xbf16>, vector<8x128xf32> -> vector<8x128xf32>
    %c0_7 = arith.constant 0 : index
    %c0_8 = arith.constant 0 : index
    %c0_9 = arith.constant 0 : index
    %12 = vector.load %arg3[%c0_7, %c0_8, %c0_9] : memref<1x1x128xf32, #tpu.memory_space<vmem>>, vector<1x1x128xf32>
    %13 = vector.shape_cast %12 : vector<1x1x128xf32> to vector<1x128xf32>
    %14 = vector.broadcast %13 : vector<1x128xf32> to vector<8x128xf32>
    %15 = arith.addf %11, %14 : vector<8x128xf32>
    %cst_10 = arith.constant 0.000000e+00 : f32
    %16 = vector.broadcast %cst_10 : f32 to vector<8x128xf32>
    %17 = arith.cmpf oge, %15, %16 : vector<8x128xf32>
    %cst_11 = arith.constant 2.000000e-01 : f32
    %18 = vector.broadcast %cst_11 : f32 to vector<8x128xf32>
    %19 = arith.mulf %18, %15 : vector<8x128xf32>
    %20 = arith.select %17, %15, %19 : vector<8x128xi1>, vector<8x128xf32>
    %21 = arith.truncf %20 : vector<8x128xf32> to vector<8x128xbf16>
    %c0_12 = arith.constant 0 : index
    %c0_13 = arith.constant 0 : index
    %22 = vector.load %arg6[%c0_12, %c0_13] : memref<128x128xbf16, #tpu.memory_space<vmem>>, vector<128x128xbf16>
    %cst_14 = arith.constant dense<0.000000e+00> : vector<8x128xf32>
    %23 = tpu.matmul %21, %22, %cst_14 {dimension_numbers = #tpu.dot_dimension_numbers<[1], [0], [0], [1], [0, 0, 1, 1], [], []>} : vector<8x128xbf16>, vector<128x128xbf16>, vector<8x128xf32> -> vector<8x128xf32>
    %c0_15 = arith.constant 0 : index
    %c0_16 = arith.constant 0 : index
    %24 = vector.load %arg7[%c0_15, %c0_16] : memref<1x128xf32, #tpu.memory_space<vmem>>, vector<1x128xf32>
    %25 = vector.broadcast %24 : vector<1x128xf32> to vector<8x128xf32>
    %26 = arith.addf %23, %25 : vector<8x128xf32>
    %cst_17 = arith.constant 0.000000e+00 : f32
    %27 = vector.broadcast %cst_17 : f32 to vector<8x128xf32>
    %28 = arith.cmpf oge, %26, %27 : vector<8x128xf32>
    %cst_18 = arith.constant 2.000000e-01 : f32
    %29 = vector.broadcast %cst_18 : f32 to vector<8x128xf32>
    %30 = arith.mulf %29, %26 : vector<8x128xf32>
    %31 = arith.select %28, %26, %30 : vector<8x128xi1>, vector<8x128xf32>
    %32 = arith.truncf %31 : vector<8x128xf32> to vector<8x128xbf16>
    %c0_19 = arith.constant 0 : index
    %c0_20 = arith.constant 0 : index
    %33 = vector.load %arg8[%c0_19, %c0_20] : memref<128x128xbf16, #tpu.memory_space<vmem>>, vector<128x128xbf16>
    %cst_21 = arith.constant dense<0.000000e+00> : vector<8x128xf32>
    %34 = tpu.matmul %32, %33, %cst_21 {dimension_numbers = #tpu.dot_dimension_numbers<[1], [0], [0], [1], [0, 0, 1, 1], [], []>} : vector<8x128xbf16>, vector<128x128xbf16>, vector<8x128xf32> -> vector<8x128xf32>
    %c0_22 = arith.constant 0 : index
    %c0_23 = arith.constant 0 : index
    %35 = vector.load %arg9[%c0_22, %c0_23] : memref<1x128xf32, #tpu.memory_space<vmem>>, vector<1x128xf32>
    %36 = vector.broadcast %35 : vector<1x128xf32> to vector<8x128xf32>
    %37 = arith.addf %34, %36 : vector<8x128xf32>
    %cst_24 = arith.constant 0.000000e+00 : f32
    %38 = vector.broadcast %cst_24 : f32 to vector<8x128xf32>
    %39 = arith.cmpf oge, %37, %38 : vector<8x128xf32>
    %cst_25 = arith.constant 2.000000e-01 : f32
    %40 = vector.broadcast %cst_25 : f32 to vector<8x128xf32>
    %41 = arith.mulf %40, %37 : vector<8x128xf32>
    %42 = arith.select %39, %37, %41 : vector<8x128xi1>, vector<8x128xf32>
    %43 = arith.truncf %42 : vector<8x128xf32> to vector<8x128xbf16>
    %c0_26 = arith.constant 0 : index
    %c0_27 = arith.constant 0 : index
    %44 = vector.load %arg10[%c0_26, %c0_27] : memref<128x64xbf16, #tpu.memory_space<vmem>>, vector<128x64xbf16>
    %cst_28 = arith.constant dense<0.000000e+00> : vector<8x64xf32>
    %45 = tpu.matmul %43, %44, %cst_28 {dimension_numbers = #tpu.dot_dimension_numbers<[1], [0], [0], [1], [0, 0, 1, 1], [], []>} : vector<8x128xbf16>, vector<128x64xbf16>, vector<8x64xf32> -> vector<8x64xf32>
    %c0_29 = arith.constant 0 : index
    %c0_30 = arith.constant 0 : index
    %46 = vector.load %arg11[%c0_29, %c0_30] : memref<1x64xf32, #tpu.memory_space<vmem>>, vector<1x64xf32>
    %47 = vector.broadcast %46 : vector<1x64xf32> to vector<8x64xf32>
    %48 = arith.addf %45, %47 : vector<8x64xf32>
    %49 = math.tanh %48 : vector<8x64xf32>
    %c0_31 = arith.constant 0 : index
    %c0_32 = arith.constant 0 : index
    %c0_33 = arith.constant 0 : index
    %50 = vector.load %arg12[%c0_31, %c0_32, %c0_33] : memref<1x8x64xf32, #tpu.memory_space<vmem>>, vector<1x8x64xf32>
    %51 = vector.shape_cast %50 : vector<1x8x64xf32> to vector<8x64xf32>
    %52 = vector.shape_cast %49 : vector<8x64xf32> to vector<1x8x64xf32>
    tpu.vector_store %arg12[%c0_31, %c0_32, %c0_33], %52 {strides = array<i32>} : memref<1x8x64xf32, #tpu.memory_space<vmem>>, vector<1x8x64xf32>,
    return
  }
  func.func @transform_0(%arg0: i32, %arg1: i32) -> (i32, i32, i32) {
    %c0_i32 = arith.constant 0 : i32
    %c0_i32_0 = arith.constant 0 : i32
    return %arg0, %arg1, %c0_i32 : i32, i32, i32
  }
  func.func @transform_1(%arg0: i32, %arg1: i32) -> (i32, i32, i32) {
    %c0_i32 = arith.constant 0 : i32
    %c0_i32_0 = arith.constant 0 : i32
    %c0_i32_1 = arith.constant 0 : i32
    return %arg0, %c0_i32, %c0_i32_0 : i32, i32, i32
  }
  func.func @transform_2(%arg0: i32, %arg1: i32) -> (i32, i32) {
    %c0_i32 = arith.constant 0 : i32
    %c0_i32_0 = arith.constant 0 : i32
    %c0_i32_1 = arith.constant 0 : i32
    return %c0_i32, %c0_i32_0 : i32, i32
  }
  func.func @transform_3(%arg0: i32, %arg1: i32) -> (i32, i32) {
    %c0_i32 = arith.constant 0 : i32
    %c0_i32_0 = arith.constant 0 : i32
    %c0_i32_1 = arith.constant 0 : i32
    return %c0_i32, %c0_i32_0 : i32, i32
  }
  func.func @transform_4(%arg0: i32, %arg1: i32) -> (i32, i32) {
    %c0_i32 = arith.constant 0 : i32
    %c0_i32_0 = arith.constant 0 : i32
    %c0_i32_1 = arith.constant 0 : i32
    return %c0_i32, %c0_i32_0 : i32, i32
  }
  func.func @transform_5(%arg0: i32, %arg1: i32) -> (i32, i32) {
    %c0_i32 = arith.constant 0 : i32
    %c0_i32_0 = arith.constant 0 : i32
    %c0_i32_1 = arith.constant 0 : i32
    return %c0_i32, %c0_i32_0 : i32, i32
  }
  func.func @transform_6(%arg0: i32, %arg1: i32) -> (i32, i32) {
    %c0_i32 = arith.constant 0 : i32
    %c0_i32_0 = arith.constant 0 : i32
    %c0_i32_1 = arith.constant 0 : i32
    return %c0_i32, %c0_i32_0 : i32, i32
  }
  func.func @transform_7(%arg0: i32, %arg1: i32) -> (i32, i32) {
    %c0_i32 = arith.constant 0 : i32
    %c0_i32_0 = arith.constant 0 : i32
    %c0_i32_1 = arith.constant 0 : i32
    return %c0_i32, %c0_i32_0 : i32, i32
  }
  func.func @transform_8(%arg0: i32, %arg1: i32) -> (i32, i32) {
    %c0_i32 = arith.constant 0 : i32
    %c0_i32_0 = arith.constant 0 : i32
    %c0_i32_1 = arith.constant 0 : i32
    return %c0_i32, %c0_i32_0 : i32, i32
  }
  func.func @transform_9(%arg0: i32, %arg1: i32) -> (i32, i32) {
    %c0_i32 = arith.constant 0 : i32
    %c0_i32_0 = arith.constant 0 : i32
    %c0_i32_1 = arith.constant 0 : i32
    return %c0_i32, %c0_i32_0 : i32, i32
  }
  func.func @transform_10(%arg0: i32, %arg1: i32) -> (i32, i32, i32) {
    %c0_i32 = arith.constant 0 : i32
    %c0_i32_0 = arith.constant 0 : i32
    return %arg0, %arg1, %c0_i32 : i32, i32, i32
  }
}

</mosaic_0001>

<bundles_post_ra>
// kernel: tpu_custom_call.1
= control target key start
LH: loop header
LB: loop body
LE: loop exit
PB: predicated region body
PF: predicated region fallthrough
CT: control target
= control target key end

     0   :  { %s2025_s0 = inlined_call_operand.hbm [shape: f32[2,8,8], index: 0, kind: input, shape index: {}]   ;;  %s2026_s1 = inlined_call_operand.vmem [shape: f32[2,1,128], index: 1, kind: input, shape index: {}]   ;;  %s2027_s2 = inlined_call_operand.hbm [shape: f32[8,64], index: 2, kind: input, shape index: {}]   ;;  %s2028_s3 = inlined_call_operand.vmem [shape: bf16[64,128], index: 3, kind: input, shape index: {}]   ;;  %s2029_s4 = inlined_call_operand.vmem [shape: bf16[128,128], index: 4, kind: input, shape index: {}]   ;;  %s2030_s5 = inlined_call_operand.vmem [shape: f32[1,128], index: 5, kind: input, shape index: {}]   ;;  %s2031_s6 = inlined_call_operand.hbm [shape: bf16[128,128], index: 6, kind: input, shape index: {}]   ;;  %s2032_s7 = inlined_call_operand.vmem [shape: f32[1,128], index: 7, kind: input, shape index: {}]   ;;  %s2033_s8 = inlined_call_operand.vmem [shape: bf16[128,64], index: 8, kind: input, shape index: {}]   ;;  %s2034_s9 = inlined_call_operand.vmem [shape: f32[1,64], index: 9, kind: input, shape index: {}]   ;;  %s2035_s10 = inlined_call_operand.hbm [shape: f32[2,8,64], index: 10, kind: output, shape index: {}]  }
   0x1   :  { %2044 = sst [smem:[#allocation16_spill]] %s2027_s2 }
   0x2   :  { %2045 = sst [smem:[#allocation17_spill]] %s2031_s6 }
   0x3   :  { %15 = vsyncpa [#allocation3], 0 }
   0x4   :  { %17 = vsyncpa [#allocation3 + $0x1], 0 }
   0x5   :  { %18 = vsyncpa [#allocation6], 0 }
   0x6   :  { %19 = vsyncpa [#allocation4], 0 }
   0x7   :  { %21 = vsyncpa [#allocation4 + $0x1], 0  ;;  %s1704_s13 = smov 0   ;;  %s1706_s14 = smov 0  }
   0x8   :  { %s1708_s15 = smov 0   ;;  %s1710_s16 = smov 0  }
   0x9   :  { %s1712_s17 = smov 0   ;;  %s1714_s18 = smov 0  }
   0xa LB: > { %2046 = sst [smem:[#allocation12_spill]] %s1613_s13  ;;  %s1172_s19 = sadd.s32 4294967295, %s1633_s18   ;;  %s1633_s18 = sphi %s1714_s18, %s27_s18   ;;  %s1629_s17 = sphi %s1712_s17, %s2069_s17   ;;  %s1625_s16 = sphi %s1710_s16, %s2068_s16   ;;  %s1621_s15 = sphi %s1708_s15, %s2072_s15   ;;  %s1617_s14 = sphi %s1706_s14, %s2071_s14   ;;  %s1613_s13 = sphi %s1704_s13, %s2070_s13  }
   0xb   : > { %2047 = sst [smem:[#allocation13_spill]] %s1629_s17  ;;  %s1173_s20 = sadd.s32 4294967294, %s1633_s18  }
   0xc   : > { %p61_p0 = scmp.ne.s32.totalorder %s1617_s14, %s1613_s13  ;;  %p1738_p1 = scmp.eq.s32.totalorder %s1172_s19, 0 }
   0xd   : > { %p1742_p2 = scmp.eq.s32.totalorder %s1172_s19, 1  ;;  %p287_p3 = scmp.eq.s32.totalorder %s1173_s20, 1 }
   0xe   : > { %s2048_s21 = scalar_select %p1738_p1, 1, 0 }
   0xf   : > { %s2049_s22 = scalar_select %p1742_p2, 1, 0 }
  0x10   : > { %p1748_p4 = por %p1738_p1, %p61_p0  ;;  %p1174_p5 = scmp.ge.s32.totalorder %s1633_s18, 1 }
  0x11   : > { %p1753_p6 = por %p287_p3, %p61_p0  ;;  %p294_p7 = scmp.lt.s32.totalorder %s1633_s18, 3 }
  0x12   : > { %s2050_s23 = scalar_select %p1748_p4, 1, 0 }
  0x13   : > { %s2051_s24 = scalar_select %p1753_p6, 1, 0 }
  0x14   : > { %p1758_p8 = pnand %p1174_p5, %p294_p7  ;;  %s1635_s26 = smov [#allocation5]  }
  0x15   : > { %2052 = sst [smem:[#allocation14_spill]] %s2051_s24  ;;  %s307_s27 = sshll.u32 %s1635_s26, 4  ;;  %s308_s27 = int_to_ptr.vmem [resolvable:$true] %s307_s27 }
  0x16   : > { %s2053_s25 = scalar_select %p1758_p8, 1, 0 }
  0x17   : > { %p1354_p10 = pneg %p1758_p8  ;;  %s1636_s28 = smov [#allocation7]  }
  0x18   : > { %s326_s29 = sshll.u32 %s1636_s28, 4  ;;  %s1480_s11 = scalar_lea.vmem %s308_s27, 128  ;;  %s327_s29 = int_to_ptr.vmem [resolvable:$true] %s326_s29 }
  0x19   : > { %p1767_p11 = pnand %p1354_p10, %p1738_p1  ;;  %p1481_p13 = scmp.ne.s32.totalorder %s308_s27, %s1480_s11 }
  0x1a   : > { %p1488_p5 = scmp.lt.s32.totalorder %s308_s27, %s308_s27  ;;  %p1489_p7 = scmp.lt.s32.totalorder %s1480_s11, %s1480_s11 }
  0x1b   : > { %p1471_p12 = pneg %p1767_p11 }
  0x1c   : > { %p1490_p9 = por %p1489_p7, %p1488_p5 }
  0x1d   : > { %p1483_p0 = pnand %p1481_p13, %p1471_p12 }
  0x1f   : > { %p1484_p3 = pneg %p1483_p0 }
  0x21   : > { %p1491_p6 = pnand %p1490_p9, %p1484_p3 }
  0x23   : > { %1494 = shalt.err (!%p1491_p6)
}
  0x24   : > { %s2055_s2 = sld [smem:[#allocation16_spill]]  ;;  %s1506_s20 = scalar_lea.vmem %s327_s29, 1024 }
  0x25   : > { %p1507_p10 = scmp.ne.s32.totalorder %s327_s29, %s1506_s20  ;;  %p1514_p13 = scmp.lt.s32.totalorder %s327_s29, %s327_s29 }
  0x26   : > { %p1515_p0 = scmp.lt.s32.totalorder %s1506_s20, %s1506_s20 }
  0x27   : > { %p1509_p1 = pnand %p1507_p10, %p1471_p12 }
  0x28   : > { %p1516_p8 = por %p1515_p0, %p1514_p13 }
  0x29   : > { %p1510_p4 = pneg %p1509_p1 }
  0x2a   : > { %1357 = dma.hbm_to_vmem [thread:$0]  (!%p1767_p11), %s2055_s2, 128, %s308_s27, [#allocation6]  }
  0x2b   : > { %p1517_p2 = pnand %p1516_p8, %p1510_p4 }
  0x2d   : > { %1520 = shalt.err (!%p1517_p2)
}
  0x2e   : > { %s1637_s26 = smov 64   ;;  %s1638_s27 = smov 4  }
  0x2f   : > { %s2056_s6 = sld [smem:[#allocation17_spill]]  ;;  %s39_s12 = sadd.s32 1, %s1629_s17 }
  0x30   : > { %s48_s19 = sadd.s32 1, %s1621_s15  ;;  %p41_p1 = scmp.ge.s32.totalorder %s39_s12, 2 }
  0x31   : > { %p55_p2 = scmp.ne.s32.totalorder %s1621_s15, %s1617_s14  ;;  %p56_p4 = scmp.eq.s32.totalorder %s1633_s18, 0 }
  0x32   : > { %p1371_p6 = scmp.lt.s32.totalorder %s1633_s18, 2  ;;  %s2074_s12 = smov (%p41_p1, %s39_s12), 0 }
  0x33   : > { %2057 = sst [smem:[#allocation15_spill]] %s2074_s12  ;;  %p57_p8 = por %p56_p4, %p55_p2 }
  0x34   : > { %p2058_p9 = scmp.ne.s32.totalorder %s2049_s22, 0  ;;  %s43_s30 = ssub.s32 %s1629_s17, %s2074_s12 }
  0x35   : > { %1360 = dma.hbm_to_vmem [thread:$0]  (!%p1767_p11), %s2056_s6, 1024, %s327_s29, [#allocation6], %s1637_s26, %s1637_s26, %s1638_s27  }
  0x36   : > { %p1799_p12 = por %p2058_p9, %p55_p2  ;;  %s349_s28 = sand.u32 1, %s1621_s15  }
  0x37   : > { %p46_p3 = scmp.eq.s32.totalorder %s43_s30, 0  ;;  %s1178_s29 = sshll.u32 %s349_s28, 3 }
  0x38   : > { %s1179_s26 = sshll.u32 %s1629_s17, 7  ;;  %s353_s24 = scalar_lea.vmem [#allocation2], %s1178_s29 }
  0x39   : > { %s1808_s27 = scalar_select %p46_p3, %s1621_s15, %s48_s19  }
  0x3a   : > { %s359_s6 = scalar_lea.hbm %s2025_s0, %s1179_s26  ;;  %s361_s13 = sshll.u32 %s353_s24, 4  ;;  %s362_s13 = int_to_ptr.vmem [resolvable:$true] %s361_s13 }
  0x3b   : > { %p1815_p11 = pnand %p1371_p6, %p57_p8  ;;  %s350_s12 = scalar_lea.sflag [#allocation3], %s349_s28 }
  0x3c   : > { %s1534_s30 = scalar_lea.vmem %s362_s13, 128  ;;  %s1639_s19 = smov [#allocation2]  }
  0x3d   : > { %p1523_p5 = pneg %p1815_p11  ;;  %p1535_p7 = scmp.ne.s32.totalorder %s362_s13, %s1534_s30 }
  0x3e   : > { %s1539_s17 = sshll.u32 %s1639_s19, 4  ;;  %s1540_s17 = int_to_ptr.vmem [resolvable:$false] %s1539_s17 }
  0x3f   : > { %p1537_p10 = pnand %p1535_p7, %p1523_p5  ;;  %s1541_s2 = scalar_lea.vmem %s1540_s17, 256 }
  0x40   : > { %p1542_p0 = scmp.lt.s32.totalorder %s362_s13, %s1540_s17  ;;  %p1543_p1 = scmp.lt.s32.totalorder %s1541_s2, %s1534_s30 }
  0x41   : > { %p1538_p13 = pneg %p1537_p10 }
  0x42   : > { %p1544_p2 = por %p1543_p1, %p1542_p0 }
  0x44   : > { %p1545_p4 = pnand %p1544_p2, %p1538_p13 }
  0x46   : > { %1548 = shalt.err (!%p1545_p4)
}
  0x47   : > { %1364 = dma.hbm_to_vmem [thread:$0]  (!%p1815_p11), %s359_s6, 128, %s362_s13, %s350_s12  }
  0x48   : > { %p2061_p6 = scmp.ne.s32.totalorder %s2053_s25, 0 }
  0x49   : > { %s1826_s24 = sand.u32 (!%p2061_p6), 1, %s1617_s14   ;;  %p2062_p8 = scmp.ne.s32.totalorder (!%p2061_p6), %s2050_s23, 0 }
  0x4a   : > { %376 = sbr.rel (%p2061_p6) target bundleno = 1187 (0x4a3), region = 60  ;;  %s1181_s28 = sshll.u32 (!%p2061_p6), %s1826_s24, 3 }
  0x4b   : > { %s379_s29 = scalar_lea.sflag (!%p2061_p6), [#allocation3], %s1826_s24  ;;  %s382_s17 = scalar_lea.vmem (!%p2061_p6), [#allocation2], %s1181_s28 }
  0x4f   : > { %1600 = dma.done.wait (%p2062_p8), %s379_s29, 128  }
  0x50   : > { %1602 = vsyncadd (%p2062_p8), %s379_s29, 4294967168  ;;  %p2063_p9 = scmp.ne.s32.totalorder %s2048_s21, 0 }
  0x52   : > { %1604 = dma.done.wait (%p2063_p9), [#allocation6], 1152  }
  0x53   : > { %1606 = vsyncadd (%p2063_p9), [#allocation6], 4294966144  ;;  %v1640_v0 = vmov 0.0   ;;  %vm1641_vm0 = vmmov 0   ;;  %vm436_vm1 = vcmask 64512   ;;  %v435_v1 = vld [vmem:[#allocation5] sm:$0xff] }
  0x54   : > { %1261 = vmatprep.subr.mxu1 %v1640_v0  ;;  %1263 = vmatprep.mubr.msk.f32.mxu1 %vm1641_vm0, %v1640_v0  ;;  %v434_v2 = vld [vmem:[%s382_s17] sm:$0xff]  ;;  %v1435_v3 = vld [vmem:[%s2028_s3 + $0x18] sm:$0xff]   ;;  %v1436_v4 = vld [vmem:[%s2028_s3 + $0x10] sm:$0xff]   ;;  %v1642_v25 = vmov 683565275   ;;  %p430_p3 = scmp.lt.s32.totalorder %s1625_s16, 1 }
  0x55   : > { %1278 = vmatprep.subr.bf16.mxu0 %v1640_v0  ;;  %1294 = vmatprep.mubr.msk.bf16.mxu0 %vm1641_vm0, %v1640_v0  ;;  %v1437_v5 = vld [vmem:[%s2028_s3 + $0x8] sm:$0xff]   ;;  %v1438_v6 = vld [vmem:[%s2028_s3] sm:$0xff]   ;;  %v1439_v7 = vld [vmem:[%s2029_s4 + $0x38] sm:$0xff]   ;;  %v1643_v27 = vmov 2475754826   ;;  %s1224_s22 = sshll.u32 %s1625_s16, 7 }
  0x56   : > { %1262 = vmatpush3.msra.mxu1 %v435_v1  ;;  %1279 = vmatpush3.bf16.msra.mxu0 %v1439_v7  ;;  %v1440_v8 = vld [vmem:[%s2029_s4 + $0x30] sm:$0xff]   ;;  %v1441_v9 = vld [vmem:[%s2029_s4 + $0x28] sm:$0xff]   ;;  %v1442_v10 = vld [vmem:[%s2029_s4 + $0x20] sm:$0xff]   ;;  %v1644_v30 = vmov 2131351028   ;;  %s431_s19 = scalar_select %p430_p3, %s1625_s16, 1 }
  0x57   : > { %1264 = vmatmul.mubr.msk.f32.vlgmr.msra.gmra.mxu1 %vm436_vm1, %v434_v2  ;;  %1266 = vmatprep.subr.bf16.mxu1 %v1640_v0  ;;  %v1443_v11 = vld [vmem:[%s2029_s4 + $0x18] sm:$0xff]   ;;  %v1444_v12 = vld [vmem:[%s2029_s4 + $0x10] sm:$0xff]   ;;  %v1645_v33 = vmov 2102212464   ;;  %v1646_v36 = vmov 920167782  }
  0x58   : > { %1274 = vmatprep.mubr.msk.bf16.mxu1 %vm1641_vm0, %v1640_v0  ;;  %1267 = vmatpush3.bf16.msra.mxu1 %v1435_v3  ;;  %v1647_v39 = vmov 1326507024   ;;  %vm658_vm1 = vcmask 523264   ;;  %s432_s17 = scalar_lea.vmem %s2026_s1, %s431_s19  ;;  %s429_s30 = scalar_lea.vmem [#allocation8], %s1181_s28 }
  0x59   : > { %1268 = vmatprep.subr.bf16.mxu1 %v1640_v0  ;;  %1280 = vmatprep.subr.bf16.mxu0 %v1640_v0  ;;  %s1064_s19 = sshll.u32 %s429_s30, 4  ;;  %s1050_s6 = scalar_lea.sflag [#allocation4], %s1826_s24  ;;  %s1065_s19 = int_to_ptr.vmem [resolvable:$true] %s1064_s19 }
  0x5a   : > { %1281 = vmatpush3.bf16.msra.mxu0 %v1440_v8  ;;  %s1549_s13 = scalar_lea.vmem %s1065_s19, 128  ;;  %s1648_s21 = smov [#allocation8]  }
  0x5b   : > { %1282 = vmatprep.subr.bf16.mxu0 %v1640_v0  ;;  %p1550_p11 = scmp.ne.s32.totalorder %s1065_s19, %s1549_s13  ;;  %s1553_s16 = sshll.u32 %s1648_s21, 4  ;;  %s1554_s16 = int_to_ptr.vmem [resolvable:$false] %s1553_s16 }
  0x5c   : > { %1269 = vmatpush3.bf16.msra.mxu1 %v1436_v4  ;;  %s1555_s28 = scalar_lea.vmem %s1554_s16, 256  ;;  %p1556_p10 = scmp.lt.s32.totalorder %s1065_s19, %s1554_s16 }
  0x5d   : > { %1270 = vmatprep.subr.bf16.mxu1 %v1640_v0  ;;  %p1551_p5 = pnand %p1550_p11, %p1799_p12  ;;  %p1557_p13 = scmp.lt.s32.totalorder %s1555_s28, %s1549_s13 }
  0x5e   : > { %1283 = vmatpush3.bf16.msra.mxu0 %v1441_v9 }
  0x5f   : > { %1284 = vmatprep.subr.bf16.mxu0 %v1640_v0  ;;  %p1552_p7 = pneg %p1551_p5  ;;  %p1558_p0 = por %p1557_p13, %p1556_p10 }
  0x60   : > { %1271 = vmatpush3.bf16.msra.mxu1 %v1437_v5 }
  0x61   : > { %1272 = vmatprep.subr.bf16.mxu1 %v1640_v0  ;;  %p1559_p1 = pnand %p1558_p0, %p1552_p7 }
  0x62   : > { %1285 = vmatpush3.bf16.msra.mxu0 %v1442_v10 }
  0x63   : > { %1286 = vmatprep.subr.bf16.mxu0 %v1640_v0 }
  0x64   : > { %1273 = vmatpush3.bf16.msra.mxu1 %v1438_v6 }
  0x65   : > { %1298 = vmatprep.subr.bf16.mxu1 %v1640_v0 }
  0x66   : > { %1287 = vmatpush3.bf16.msra.mxu0 %v1443_v11 }
  0x67   : > { %1288 = vmatprep.subr.bf16.mxu0 %v1640_v0 }
  0x6a   : > { %1289 = vmatpush3.bf16.msra.mxu0 %v1444_v12 }
  0x6b   : > { %1290 = vmatprep.subr.bf16.mxu0 %v1640_v0 }
 0x117   : > { %v1889_v13 = vpop.f32.mrf.mxu1 }
 0x118   : > { %v516_v14 = vand.u32 2139095040, %v1889_v13  ;;  %v513_v19 = vand.u32 2147483647, %v1889_v13  ;;  %vm515_vm9 = vcmp.lt.s32.totalorder %v1889_v13, 0  ;;  %vm605_vm15 = vweird.f32 %v1889_v13 }
 0x119   : > { %v1265_v15 = vpop.f32.mrf.mxu1 }
 0x11a   : > { %v517_v16 = vshrl.u32 %v516_v14, 23  ;;  %v520_v22 = vand.u32 8388607, %v513_v19  ;;  %vm514_vm10 = vcmp.le.f32.partialorder %v513_v19, 0.7853982 }
 0x11c   : > { %v1186_v17 = vadd.s32 4294967169, %v517_v16  ;;  %v521_v41 = vor.u32 8388608, %v520_v22 }
 0x11e   : > { %v523_v18 = vadd.s32 1, %v1186_v17  ;;  %v561_v55 = vshll.u32 %v521_v41, 8 }
 0x120   : > { %vm524_vm2 = vcmp.gt.s32.totalorder %v523_v18, 0 }
 0x121   : > { %v525_v20 = vsel %vm524_vm2, %v523_v18, 0 }
 0x122   : > { %v527_v21 = vand.u32 31, %v525_v20  ;;  %v526_v24 = vshrl.u32 %v525_v20, 5 }
 0x124   : > { %v528_v23 = vsub.s32 32, %v527_v21  ;;  %v530_v26 = vshll.u32 %v1642_v25, %v527_v21  ;;  %v533_v28 = vshll.u32 %v1643_v27, %v527_v21  ;;  %v536_v32 = vshll.u32 %v1644_v30, %v527_v21 }
 0x125   : > { %v539_v35 = vshll.u32 %v1645_v33, %v527_v21  ;;  %v542_v38 = vshll.u32 %v1646_v36, %v527_v21  ;;  %vm545_vm3 = vcmp.lt.s32.totalorder %v526_v24, 1  ;;  %vm548_vm4 = vcmp.lt.s32.totalorder %v526_v24, 4 }
 0x126   : > { %v531_v29 = vshrl.u32 %v1643_v27, %v528_v23  ;;  %v534_v31 = vshrl.u32 %v1644_v30, %v528_v23  ;;  %v537_v34 = vshrl.u32 %v1645_v33, %v528_v23  ;;  %v540_v37 = vshrl.u32 %v1646_v36, %v528_v23 }
 0x127   : > { %v543_v40 = vshrl.u32 %v1647_v39, %v528_v23  ;;  %v529_v50 = vshrl.u32 %v1642_v25, %v528_v23  ;;  %vm547_vm5 = vcmp.lt.s32.totalorder %v526_v24, 3  ;;  %vm546_vm6 = vcmp.lt.s32.totalorder %v526_v24, 2 }
 0x128   : > { %v532_v42 = vor.u32 %v531_v29, %v530_v26  ;;  %v535_v43 = vor.u32 %v534_v31, %v533_v28  ;;  %v538_v44 = vor.u32 %v537_v34, %v536_v32  ;;  %v541_v45 = vor.u32 %v540_v37, %v539_v35 }
 0x129   : > { %v544_v46 = vor.u32 %v543_v40, %v542_v38  ;;  %v510_v36 = vlaneseq }
 0x12a   : > { %v550_v47 = vsel %vm548_vm4, %v538_v44, 2102212464  ;;  %v553_v48 = vsel %vm545_vm3, %v532_v42, %v535_v43  ;;  %v557_v49 = vsel %vm545_vm3, %v535_v43, %v538_v44  ;;  %v554_v51 = vsel %vm548_vm4, %v541_v45, 920167782 }
 0x12b   : > { %v558_v52 = vsel %vm548_vm4, %v544_v46, 1326507024  ;;  %v555_v53 = vsel %vm547_vm5, %v538_v44, %v554_v51  ;;  %v549_v56 = vsel %vm545_vm3, %v529_v50, %v532_v42  ;;  %v551_v57 = vsel %vm547_vm5, %v535_v43, %v550_v47  ;;  %v1448_v50 = vld [vmem:[#allocation7 + $0x30] sm:$0xff]   ;;  %v1449_v51 = vld [vmem:[#allocation7 + $0x28] sm:$0xff]  }
 0x12c   : > { %v559_v54 = vsel %vm547_vm5, %v541_v45, %v558_v52  ;;  %v556_v58 = vsel %vm546_vm6, %v553_v48, %v555_v53  ;;  %v552_v1 = vsel %vm546_vm6, %v549_v56, %v551_v57  ;;  %v511_v39 = vand.u32 127, %v510_v36  ;;  %v1445_v48 = vld [vmem:[%s2029_s4 + $0x8] sm:$0xff]   ;;  %v1450_v52 = vld [vmem:[#allocation7 + $0x20] sm:$0xff]   ;;  %v1451_v53 = vld [vmem:[#allocation7 + $0x18] sm:$0xff]  }
 0x12d   : > { %v560_v59 = vsel %vm546_vm6, %v557_v49, %v559_v54  ;;  %v1898_v62 = vmul.u32.u64.low %v561_v55, %v556_v58  ;;  %v1899_v63 = vmul.u32.u64.high %v561_v55, %v556_v58, %v1898_v62  ;;  %v568_v3 = vmul.u32 %v561_v55, %v552_v1  ;;  %1291 = vmatpush3.bf16.msra.mxu0 %v1445_v48  ;;  %v1446_v49 = vld [vmem:[%s2029_s4] sm:$0xff]   ;;  %v1452_v54 = vld [vmem:[#allocation7 + $0x10] sm:$0xff]  }
 0x12e   : > { %v1895_v60 = vmul.u32.u64.low %v561_v55, %v560_v59  ;;  %v1896_v61 = vmul.u32.u64.high %v561_v55, %v560_v59, %v1895_v60  ;;  %vm512_vm13 = vcmp.lt.s32.totalorder %v511_v39, 3  ;;  %1292 = vmatprep.subr.bf16.mxu0 %v1640_v0  ;;  %v1190_v55 = vld [vmem:[%s432_s17] ss:$0 sm:$0xff]  ;;  %s1982_s17 = scalar_lea.hbm %s2035_s10, %s1224_s22 }
 0x12f   : > { %v571_v2 = vadd.s32 1, %v1899_v63  ;;  %v1453_v1 = vld [vmem:[#allocation7 + $0x8] sm:$0xff]  }
 0x130   : > { %vm570_vm7 = vc.u32 %v1896_v61, %v1898_v62  ;;  %v569_v16 = vadd.s32 %v1898_v62, %v1896_v61 }
 0x131   : > { %v572_v4 = vsel %vm570_vm7, %v571_v2, %v1899_v63  ;;  %1293 = vmatpush3.bf16.msra.mxu0 %v1446_v49  ;;  %v1454_v2 = vld [vmem:[#allocation7] sm:$0xff]  }
 0x132   : > { %v573_v5 = vadd.s32 %v572_v4, %v568_v3  ;;  %1318 = vmatprep.subr.bf16.mxu0 %v1640_v0  ;;  %v1455_v3 = vld [vmem:[%s2033_s8 + $0x38] sm:$0xff]   ;;  %v1456_v4 = vld [vmem:[%s2033_s8 + $0x30] sm:$0xff]  }
 0x134   : > { %v574_v6 = vadd.s32 536870912, %v573_v5 }
 0x136   : > { %v575_v7 = vshrl.u32 %v574_v6, 30  ;;  %v1458_v6 = vld [vmem:[%s2033_s8 + $0x20] sm:$0xff]  }
 0x138   : > { %v576_v8 = vshll.u32 %v575_v7, 30  ;;  %v599_v30 = vsub.s32 4, %v575_v7 }
 0x13a   : > { %v577_v9 = vsub.s32 %v573_v5, %v576_v8  ;;  %v600_v33 = vsel %vm515_vm9, %v599_v30, %v575_v7  ;;  %v1457_v5 = vld [vmem:[%s2033_s8 + $0x28] sm:$0xff]   ;;  %v1459_v7 = vld [vmem:[%s2033_s8 + $0x18] sm:$0xff]   ;;  %v1460_v8 = vld [vmem:[%s2033_s8 + $0x10] sm:$0xff]  }
 0x13b   : > { %v602_v34 = vsel %vm514_vm10, 0, %v600_v33  ;;  %v1214_v30 = vld [vmem:[%s2034_s9] ss:$0 sm:$0xff] }
 0x13c   : > { %v579_v10 = vsub.s32 0, %v577_v9  ;;  %v606_v35 = vadd.s32 3, %v602_v34 }
 0x13e   : > { %v1187_v11 = vmin.u32 %v579_v10, %v577_v9  ;;  %v607_v37 = vand.u32 3, %v606_v35 }
 0x140   : > { %v581_v12 = vclz %v1187_v11  ;;  %vm612_vm11 = vcmp.eq.s32.totalorder %v607_v37, 2  ;;  %vm609_vm12 = vcmp.eq.s32.totalorder %v607_v37, 0  ;;  %vm608_vm14 = vcmp.lt.s32.totalorder %v607_v37, 2 }
 0x142   : > { %v1188_v14 = vadd.s32 4294967294, %v581_v12 }
 0x144   : > { %vm1189_vm8 = vcmp.lt.s32.totalorder %v1188_v14, 0 }
 0x145   : > { %v584_v15 = vsel %vm1189_vm8, 0, %v1188_v14 }
 0x146   : > { %v585_v17 = vsub.s32 32, %v584_v15  ;;  %v589_v18 = vsub.s32 4294967266, %v584_v15  ;;  %v586_v20 = vshll.u32 %v577_v9, %v584_v15  ;;  %v1196_v9 = vld [vmem:[%s2030_s5] ss:$0 sm:$0xff] }
 0x148   : > { %v587_v21 = vshrl.u32 %v569_v16, %v585_v17  ;;  %v590_v22 = vadd.s32 127, %v589_v18 }
 0x14a   : > { %v588_v23 = vor.u32 %v587_v21, %v586_v20  ;;  %v591_v24 = vshll.u32 %v590_v22, 23  ;;  %v1461_v20 = vld [vmem:[%s2033_s8 + $0x8] sm:$0xff]   ;;  %v1462_v21 = vld [vmem:[%s2033_s8] sm:$0xff]  }
 0x14b   : > { %v1205_v22 = vld [vmem:[%s2032_s7] ss:$0 sm:$0xff] }
 0x14c   : > { %v592_v25 = vor.u32 4788187, %v591_v24  ;;  %v595_v27 = vcvt.s32.f32 %v588_v23 }
 0x14e   : > { %v593_v26 = vand.u32 2147483647, %v592_v25 }
 0x150   : > { %v596_v28 = vmul.f32 %v595_v27, %v593_v26 }
 0x152   : > { %v597_v29 = vxor.u32 2147483648, %v596_v28 }
 0x154   : > { %v598_v31 = vsel %vm515_vm9, %v597_v29, %v596_v28 }
 0x155   : > { %v601_v32 = vsel %vm514_vm10, %v1889_v13, %v598_v31 }
 0x156   : > { %1463 = vcosq.f32 %v601_v32 }
 0x157   : > { %1465 = vsinq.f32 %v601_v32 }
 0x163   : > { %v1464_v38 = vpop.eup %1463 }
 0x164   : > { %v1466_v40 = vpop.eup %1465  ;;  %v613_v41 = vxor.u32 2147483648, %v1464_v38 }
 0x165   : > { %v610_v42 = vxor.u32 2147483648, %v1466_v40 }
 0x166   : > { %v614_v43 = vsel %vm612_vm11, %v613_v41, %v1466_v40 }
 0x167   : > { %v611_v19 = vsel %vm609_vm12, %v1464_v38, %v610_v42 }
 0x168   : > { %v615_v44 = vsel %vm608_vm14, %v611_v19, %v614_v43 }
 0x169   : > { %v616_v45 = vsel %vm605_vm15, nan, %v615_v44 }
 0x16a   : > { %v617_v46 = vsel %vm512_vm13, %v1889_v13, %v616_v45  ;;  %v1447_v13 = vld [vmem:[#allocation7 + $0x38] sm:$0xff]  }
 0x16b   : > { %v618_v47 = vpack.c.bf16 %v617_v46, %v617_v46 }
 0x16d   : > { %1275 = vmatmul.mubr.msk.bf16.vlgmr.msra.gmra.mxu1 %vm658_vm1, %v618_v47 }
 0x16e   : > { %1314 = vmatprep.mubr.msk.bf16.mxu1 %vm1641_vm0, %v1640_v0  ;;  %1299 = vmatpush3.bf16.msra.mxu1 %v1447_v13 }
 0x16f   : > { %1300 = vmatprep.subr.bf16.mxu1 %v1640_v0 }
 0x172   : > { %1301 = vmatpush3.bf16.msra.mxu1 %v1448_v50 }
 0x173   : > { %1302 = vmatprep.subr.bf16.mxu1 %v1640_v0 }
 0x176   : > { %1303 = vmatpush3.bf16.msra.mxu1 %v1449_v51 }
 0x177   : > { %1304 = vmatprep.subr.bf16.mxu1 %v1640_v0 }
 0x17a   : > { %1305 = vmatpush3.bf16.msra.mxu1 %v1450_v52 }
 0x17b   : > { %1306 = vmatprep.subr.bf16.mxu1 %v1640_v0 }
 0x17e   : > { %1307 = vmatpush3.bf16.msra.mxu1 %v1451_v53 }
 0x17f   : > { %1308 = vmatprep.subr.bf16.mxu1 %v1640_v0 }
 0x182   : > { %1309 = vmatpush3.bf16.msra.mxu1 %v1452_v54 }
 0x183   : > { %1310 = vmatprep.subr.bf16.mxu1 %v1640_v0 }
 0x186   : > { %1311 = vmatpush3.bf16.msra.mxu1 %v1453_v1 }
 0x187   : > { %1312 = vmatprep.subr.bf16.mxu1 %v1640_v0 }
 0x18a   : > { %1313 = vmatpush3.bf16.msra.mxu1 %v1454_v2 }
 0x22d   : > { %v696_v56 = vpop.f32.mrf.mxu1 }
 0x22e   : > { %v697_v57 = vadd.f32 %v1190_v55, %v696_v56 }
 0x22f   : > { %v1276_v58 = vpop.f32.mrf.mxu1 }
 0x230   : > { %vm702_vm2 = vcmp.ge.f32.partialorder %v697_v57, 0.0  ;;  %v703_v59 = vmul.f32 0.2, %v697_v57 }
 0x231   : > { %v699_v60 = vpop.f32.mrf.mxu1 }
 0x232   : > { %v704_v61 = vsel %vm702_vm2, %v697_v57, %v703_v59 }
 0x233   : > { %v1277_v62 = vpop.f32.mrf.mxu1  ;;  %v705_v63 = vpack.c.bf16 %v704_v61, %v704_v61 }
 0x235   : > { %1295 = vmatmul.mubr.bf16.vlgmr.msra.gmra.mxu0 %v705_v63 }
 0x236   : > { %1334 = vmatprep.mubr.msk.bf16.mxu0 %vm1641_vm0, %v1640_v0  ;;  %1319 = vmatpush3.bf16.msra.mxu0 %v1455_v3 }
 0x237   : > { %1320 = vmatprep.subr.bf16.mxu0 %v1640_v0 }
 0x23a   : > { %1321 = vmatpush3.bf16.msra.mxu0 %v1456_v4 }
 0x23b   : > { %1322 = vmatprep.subr.bf16.mxu0 %v1640_v0 }
 0x23e   : > { %1323 = vmatpush3.bf16.msra.mxu0 %v1457_v5 }
 0x23f   : > { %1324 = vmatprep.subr.bf16.mxu0 %v1640_v0 }
 0x242   : > { %1325 = vmatpush3.bf16.msra.mxu0 %v1458_v6 }
 0x243   : > { %1326 = vmatprep.subr.bf16.mxu0 %v1640_v0 }
 0x246   : > { %1327 = vmatpush3.bf16.msra.mxu0 %v1459_v7 }
 0x247   : > { %1328 = vmatprep.subr.bf16.mxu0 %v1640_v0 }
 0x24a   : > { %1329 = vmatpush3.bf16.msra.mxu0 %v1460_v8 }
 0x24b   : > { %1330 = vmatprep.subr.bf16.mxu0 %v1640_v0 }
 0x24e   : > { %1331 = vmatpush3.bf16.msra.mxu0 %v1461_v20 }
 0x24f   : > { %1332 = vmatprep.subr.bf16.mxu0 %v1640_v0 }
 0x252   : > { %1333 = vmatpush3.bf16.msra.mxu0 %v1462_v21 }
 0x2f5   : > { %v811_v10 = vpop.f32.mrf.mxu0 }
 0x2f6   : > { %v812_v11 = vadd.f32 %v1196_v9, %v811_v10 }
 0x2f7   : > { %v1296_v12 = vpop.f32.mrf.mxu0 }
 0x2f8   : > { %vm817_vm0 = vcmp.ge.f32.partialorder %v812_v11, 0.0  ;;  %v818_v14 = vmul.f32 0.2, %v812_v11 }
 0x2f9   : > { %v814_v15 = vpop.f32.mrf.mxu0 }
 0x2fa   : > { %v819_v16 = vsel %vm817_vm0, %v812_v11, %v818_v14 }
 0x2fb   : > { %v820_v17 = vpack.c.bf16 %v819_v16, %v819_v16  ;;  %v1297_v18 = vpop.f32.mrf.mxu0 }
 0x2fd   : > { %1315 = vmatmul.mubr.bf16.vlgmr.msra.gmra.mxu1 %v820_v17 }
 0x3bd   : > { %v926_v23 = vpop.f32.mrf.mxu1 }
 0x3be   : > { %v927_v24 = vadd.f32 %v1205_v22, %v926_v23 }
 0x3bf   : > { %v1316_v25 = vpop.f32.mrf.mxu1 }
 0x3c0   : > { %vm932_vm3 = vcmp.ge.f32.partialorder %v927_v24, 0.0  ;;  %v933_v26 = vmul.f32 0.2, %v927_v24 }
 0x3c1   : > { %v929_v27 = vpop.f32.mrf.mxu1 }
 0x3c2   : > { %v934_v28 = vsel %vm932_vm3, %v927_v24, %v933_v26 }
 0x3c3   : > { %v935_v29 = vpack.c.bf16 %v934_v28, %v934_v28  ;;  %v1317_v0 = vpop.f32.mrf.mxu1 }
 0x3c5   : > { %1335 = vmatmul.mubr.bf16.vlgmr.msra.gmra.mxu0 %v935_v29 }
 0x485   : > { %v1041_v31 = vpop.f32.mrf.mxu0 }
 0x486   : > { %v1042_v32 = vadd.f32 %v1214_v30, %v1041_v31 }
 0x487   : > { %v1336_v33 = vpop.f32.mrf.mxu0 }
 0x488   : > { %1467 = vtanh.f32 %v1042_v32 }
 0x489   : > { %v1044_v34 = vpop.f32.mrf.mxu0 }
 0x48b   : > { %v1337_v35 = vpop.f32.mrf.mxu0 }
 0x495   : > { %v1468_v36 = vpop.eup %1467 }
 0x496   : > { %1048 = vst.msk [vmem:[%s429_s30] sm:$0xff] %vm658_vm1, %v1468_v36 }
 0x497   : > { %1562 = shalt.err (!%p1559_p1)
}
 0x498   : > { %s1563_s23 = scalar_lea.hbm %s1982_s17, 128  ;;  %s1567_s12 = scalar_lea.hbm %s2035_s10, 256 }
 0x499   : > { %p1564_p2 = scmp.ne.s32.totalorder %s1982_s17, %s1563_s23  ;;  %p1568_p8 = scmp.lt.s32.totalorder %s1982_s17, %s2035_s10 }
 0x49a   : > { %p1569_p9 = scmp.lt.s32.totalorder %s1567_s12, %s1563_s23 }
 0x49b   : > { %p1565_p4 = pnand %p1564_p2, %p1799_p12 }
 0x49c   : > { %p1570_p3 = por %p1569_p9, %p1568_p8 }
 0x49d   : > { %p1566_p6 = pneg %p1565_p4 }
 0x49f   : > { %p1571_p11 = pnand %p1570_p3, %p1566_p6 }
 0x4a1   : > { %1574 = shalt.err (!%p1571_p11)
}
 0x4a2   : > { %1352 = dma.vmem_to_hbm [thread:$0]  (%p1799_p12), %s1065_s19, 128, %s1982_s17, %s1050_s6  }
 0x4a3 PF: > { %s2064_s22 = sld [smem:[#allocation12_spill]]  ;;  %p2067_p7 = scmp.ge.s32.totalorder %s1633_s18, 2 }
 0x4a4   : > { %s2065_s30 = sld [smem:[#allocation14_spill]] }
 0x4a9   : > { %s1076_s2 = sand.u32 1, %s2064_s22  }
 0x4aa   : > { %p2066_p5 = scmp.ne.s32.totalorder %s2065_s30, 0  ;;  %s1077_s29 = scalar_lea.sflag [#allocation4], %s1076_s2 }
 0x4ac   : > { %p1366_p10 = pnand %p2067_p7, %p2066_p5 }
 0x4ae   : > { %p1367_p13 = pneg %p1366_p10 }
 0x4b0   : > { %1608 = dma.done.wait (%p1367_p13), %s1077_s29, 128  }
 0x4b1   : > { %1610 = vsyncadd (%p1367_p13), %s1077_s29, 4294967168  ;;  %s27_s18 = sadd.s32 1, %s1633_s18   ;;  %s2068_s16 = sld [smem:[#allocation13_spill]] }
 0x4b2   : > { %p24_p0 = scmp.ge.s32.totalorder %s27_s18, 4   ;;  %s2069_s17 = sld [smem:[#allocation15_spill]] }
 0x4b3   : > { %s2070_s13 = smov %s1617_s14  ;;  %s2071_s14 = smov %s1621_s15 }
 0x4b4   : > { %s2072_s15 = smov %s1808_s27  ;;  %26 = sbr.rel (!%p24_p0) target bundleno = 10 (0xa), region = 116 }
 0x4b9   :  { %1082 = vsyncpa [#allocation3], 1 }
 0x4ba   :  { %1084 = vsyncpa [#allocation3 + $0x1], 1 }
 0x4bb   :  { %1085 = vsyncpa [#allocation6], 1 }
 0x4bc   :  { %1086 = vsyncpa [#allocation4], 1 }
 0x4bd   :  { %1088 = vsyncpa [#allocation4 + $0x1], 1 }

</bundles_post_ra>
